<compile_context>
chip_gen: v7x
topology: tpu7x:2x2x1
jax: 0.10.0
libtpu: 0.0.40
codegen_flags: <defaults>
</compile_context>

<pallas_src>
import functools

import numpy as np
import jax
import jax.numpy as jnp
from jax.experimental import pallas as pl
from jax.experimental.pallas import tpu as pltpu


def _qlinear_kernel(x_ref, w_ref, s_ref, z_ref, b_ref, o_ref, *,
                    bits, pack, groups, gs_eff):
    """One (bt, tn) output tile: dequantize the packed tile, one K=N bf16 matmul."""
    mask = (1 << bits) - 1
    w = w_ref[...]                      # (n8, tn) int32 packed codes
    tn = w.shape[1]

    # Lazy per-field unpack.  With the TPU re-packed layout, bit-field s of word k
    # holds the code of original input row s*n8 + k, so concatenating the fields
    # along the sublane axis yields the codes in original row order.
    # (Arithmetic shift sign-extends the top field; the `& mask` removes it.)
    q = jnp.concatenate([(w >> (bits * s)) & mask for s in range(pack)], axis=0)

    # Dequantize the whole (N, tn) tile with scales and zero points folded in
    # (f32 unpack arithmetic is portable to v5e's non-bf16 VPU), then cast to bf16
    # for the MXU.
    q3 = q.reshape(groups, gs_eff, tn).astype(jnp.float32)
    wdeq = ((q3 - z_ref[...][:, None, :]) * s_ref[...][:, None, :]
            ).astype(jnp.bfloat16).reshape(groups * gs_eff, tn)

    # Single large-K bf16 MXU matmul (K = N), f32 accumulation.
    acc = jnp.dot(x_ref[...], wdeq, preferred_element_type=jnp.float32)
    o_ref[...] = acc + b_ref[...]


def pack_qweights(qweights, bits):
    """Pack integer codes q[n, m] (0 <= q < 2**bits) into int32 words along N.

    TPU layout (replaces qinfer.pack4/pack2's CPU-cache-blocked layout): bit-field s
    of word k holds q[s * (N // pack) + k, m].  This hoists the activation column
    permute of the previous version into (offline) weight-pack time.
    """
    pack = 32 // bits
    n, m = qweights.shape
    assert n % pack == 0
    n8 = n // pack
    q = jnp.asarray(qweights).astype(jnp.uint32)
    packed = jnp.zeros((n8, m), jnp.uint32)
    for s in range(pack):
        packed = packed | (q[s * n8:(s + 1) * n8, :] << jnp.uint32(bits * s))
    return jax.lax.bitcast_convert_type(packed, jnp.int32)


def _pick_tile(dim, candidates):
    for c in candidates:
        if dim % c == 0:
            return c
    return dim


def qlinear_forward(x, packed_w, scales, zeros, bias, *, bits=4, gs=-1):
    """Pallas equivalent of qLinear.forward (gs == -1 or gs divides N)."""
    pack = 32 // bits
    x2 = x.reshape(-1, x.shape[-1])
    b, n = x2.shape
    n8 = n // pack
    m = packed_w.shape[1]
    groups = scales.shape[0]
    gs_eff = n if gs == -1 else gs
    assert n % pack == 0 and groups * gs_eff == n
    assert packed_w.shape[0] == n8

    # Tile sizes: tn a multiple of 128 (lane-dense output stores; 256 matches the
    # v6e/v7x MXU width); bt a multiple of 8 capped at 256 so the bf16 x tile plus
    # the dequantized (N, tn) weight temporaries stay inside the per-core VMEM
    # budget on every generation (v7x: 64 MiB/TC, 32 MiB default scoped limit).
    tn = _pick_tile(m, (256, 128))
    bt = b if b <= 256 else _pick_tile(b, (256, 128, 64, 32, 16, 8))
    # TODO(synk): pad the batch when b > 256 and b is not a multiple of 8.

    x_bf = x2.astype(jnp.bfloat16)        # bf16 feeds the MXU at ~4x the f32 rate
    bias2 = jnp.asarray(bias, jnp.float32).reshape(1, m)
    scales_f = jnp.asarray(scales, jnp.float32)
    zeros_f = jnp.asarray(zeros, jnp.float32)

    kernel = functools.partial(_qlinear_kernel, bits=bits, pack=pack,
                               groups=groups, gs_eff=gs_eff)

    # Rough VMEM estimate: double-buffered inputs/outputs + in-kernel dequant
    # temporaries (int32 codes + bf16 dequant tile) + accumulator.
    est = 2 * (bt * n * 2 + n8 * tn * 4 + 2 * groups * tn * 4 + tn * 4 + bt * tn * 4)
    est += n * tn * (4 + 2) + bt * tn * 4
    vmem_limit = int(min(48 * 1024 * 1024, max(32 * 1024 * 1024, 2 * est)))

    out = pl.pallas_call(
        kernel,
        out_shape=jax.ShapeDtypeStruct((b, m), jnp.float32),
        grid=(b // bt, m // tn),
        in_specs=[
            pl.BlockSpec((bt, n), lambda i, j: (i, 0)),        # activations (bf16)
            pl.BlockSpec((n8, tn), lambda i, j: (0, j)),       # packed weight tile
            pl.BlockSpec((groups, tn), lambda i, j: (0, j)),   # scales column tile
            pl.BlockSpec((groups, tn), lambda i, j: (0, j)),   # zeros column tile
            pl.BlockSpec((1, tn), lambda i, j: (0, j)),        # bias column tile
        ],
        out_specs=pl.BlockSpec((bt, tn), lambda i, j: (i, j)),
        compiler_params=pltpu.CompilerParams(
            dimension_semantics=("parallel", "parallel"),
            vmem_limit_bytes=vmem_limit),
    )(x_bf, packed_w, scales_f, zeros_f, bias2)
    return out


def ref_forward(x, qweights, scales, zeros, bias, gs):
    """Pure-JAX f32 reference matching qLinear.forward semantics."""
    x2 = x.reshape(-1, x.shape[-1]).astype(jnp.float32)
    n = x2.shape[1]
    gs_eff = n if gs == -1 else gs
    s_full = jnp.repeat(scales, gs_eff, axis=0)              # (N, M)
    z_full = jnp.repeat(zeros, gs_eff, axis=0)               # (N, M)
    wdeq = s_full * (qweights.astype(jnp.float32) - z_full)
    return x2 @ wdeq + bias.astype(jnp.float32)


if __name__ == "__main__":
    key = jax.random.PRNGKey(0)
    kx, kq, ks, kz, kb = jax.random.split(key, 5)

    # Small shapes implied by the module: x is (..., N) flattened to (B, N);
    # N, M are the in/out features of the wrapped linear layer.
    B0, B1, N, M = 2, 4, 128, 256

    x = jax.random.normal(kx, (B0, B1, N), jnp.float32)
    bias = jax.random.normal(kb, (M,), jnp.float32)

    # Exercise 4-bit and 2-bit, each with gs == -1 (per-channel) and group-size 32.
    for bits in (4, 2):
        qweights = jax.random.randint(kq, (N, M), 0, 1 << bits, jnp.int32)
        packed = pack_qweights(qweights, bits)
        for gs in (-1, 32):
            groups = 1 if gs == -1 else N // gs
            scales = jax.random.uniform(ks, (groups, M), jnp.float32, 0.01, 0.1)
            zeros = jax.random.randint(kz, (groups, M), 0, 1 << bits).astype(jnp.float32)

            out = qlinear_forward(x, packed, scales, zeros, bias, bits=bits, gs=gs)
            out = jax.block_until_ready(out)
            ref = ref_forward(x, qweights, scales, zeros, bias, gs)

            assert out.shape == (B0 * B1, M)
            # bf16 activations / dequantized weights => tolerance comparable to the
            # quantization error itself (as anticipated in the review).
            np.testing.assert_allclose(np.asarray(out), np.asarray(ref),
                                       rtol=2e-2, atol=1e-1)

    print("KERNEL_OK")
</pallas_src>

<mosaic_0001>
module attributes {stable_mosaic.version = 11 : i64} {
  func.func @_qlinear_kernel(%arg0: i32, %arg1: i32, %arg2: memref<8x128xbf16, #tpu.memory_space<vmem>>, %arg3: memref<16x256xi32, #tpu.memory_space<vmem>>, %arg4: memref<1x256xf32, #tpu.memory_space<vmem>>, %arg5: memref<1x256xf32, #tpu.memory_space<vmem>>, %arg6: memref<1x256xf32, #tpu.memory_space<vmem>>, %arg7: memref<8x256xf32, #tpu.memory_space<vmem>>) attributes {dimension_semantics = [#tpu.dimension_semantics<parallel>, #tpu.dimension_semantics<parallel>], iteration_bounds = array<i64: 1, 1>, scalar_prefetch = 0 : i64, scratch_operands = 0 : i64, tpu.core_type = #tpu.core_type<tc>, window_params = [{transform_indices = @transform_0, window_bounds = array<i64: 8, 128>}, {transform_indices = @transform_1, window_bounds = array<i64: 16, 256>}, {transform_indices = @transform_2, window_bounds = array<i64: 1, 256>}, {transform_indices = @transform_3, window_bounds = array<i64: 1, 256>}, {transform_indices = @transform_4, window_bounds = array<i64: 1, 256>}, {transform_indices = @transform_5, window_bounds = array<i64: 8, 256>}]} {
    %c0 = arith.constant 0 : index
    %c0_0 = arith.constant 0 : index
    %0 = vector.load %arg3[%c0, %c0_0] : memref<16x256xi32, #tpu.memory_space<vmem>>, vector<16x256xi32>
    %c0_i32 = arith.constant 0 : i32
    %1 = vector.broadcast %c0_i32 : i32 to vector<16x256xi32>
    %2 = arith.shrsi %0, %1 : vector<16x256xi32>
    %c15_i32 = arith.constant 15 : i32
    %3 = vector.broadcast %c15_i32 : i32 to vector<16x256xi32>
    %4 = arith.andi %2, %3 : vector<16x256xi32>
    %c4_i32 = arith.constant 4 : i32
    %5 = vector.broadcast %c4_i32 : i32 to vector<16x256xi32>
    %6 = arith.shrsi %0, %5 : vector<16x256xi32>
    %c15_i32_1 = arith.constant 15 : i32
    %7 = vector.broadcast %c15_i32_1 : i32 to vector<16x256xi32>
    %8 = arith.andi %6, %7 : vector<16x256xi32>
    %c8_i32 = arith.constant 8 : i32
    %9 = vector.broadcast %c8_i32 : i32 to vector<16x256xi32>
    %10 = arith.shrsi %0, %9 : vector<16x256xi32>
    %c15_i32_2 = arith.constant 15 : i32
    %11 = vector.broadcast %c15_i32_2 : i32 to vector<16x256xi32>
    %12 = arith.andi %10, %11 : vector<16x256xi32>
    %c12_i32 = arith.constant 12 : i32
    %13 = vector.broadcast %c12_i32 : i32 to vector<16x256xi32>
    %14 = arith.shrsi %0, %13 : vector<16x256xi32>
    %c15_i32_3 = arith.constant 15 : i32
    %15 = vector.broadcast %c15_i32_3 : i32 to vector<16x256xi32>
    %16 = arith.andi %14, %15 : vector<16x256xi32>
    %c16_i32 = arith.constant 16 : i32
    %17 = vector.broadcast %c16_i32 : i32 to vector<16x256xi32>
    %18 = arith.shrsi %0, %17 : vector<16x256xi32>
    %c15_i32_4 = arith.constant 15 : i32
    %19 = vector.broadcast %c15_i32_4 : i32 to vector<16x256xi32>
    %20 = arith.andi %18, %19 : vector<16x256xi32>
    %c20_i32 = arith.constant 20 : i32
    %21 = vector.broadcast %c20_i32 : i32 to vector<16x256xi32>
    %22 = arith.shrsi %0, %21 : vector<16x256xi32>
    %c15_i32_5 = arith.constant 15 : i32
    %23 = vector.broadcast %c15_i32_5 : i32 to vector<16x256xi32>
    %24 = arith.andi %22, %23 : vector<16x256xi32>
    %c24_i32 = arith.constant 24 : i32
    %25 = vector.broadcast %c24_i32 : i32 to vector<16x256xi32>
    %26 = arith.shrsi %0, %25 : vector<16x256xi32>
    %c15_i32_6 = arith.constant 15 : i32
    %27 = vector.broadcast %c15_i32_6 : i32 to vector<16x256xi32>
    %28 = arith.andi %26, %27 : vector<16x256xi32>
    %c28_i32 = arith.constant 28 : i32
    %29 = vector.broadcast %c28_i32 : i32 to vector<16x256xi32>
    %30 = arith.shrsi %0, %29 : vector<16x256xi32>
    %c15_i32_7 = arith.constant 15 : i32
    %31 = vector.broadcast %c15_i32_7 : i32 to vector<16x256xi32>
    %32 = arith.andi %30, %31 : vector<16x256xi32>
    %33 = tpu.concatenate %4, %8, %12, %16, %20, %24, %28, %32 in 0 : vector<16x256xi32>, vector<16x256xi32>, vector<16x256xi32>, vector<16x256xi32>, vector<16x256xi32>, vector<16x256xi32>, vector<16x256xi32>, vector<16x256xi32> -> vector<128x256xi32>
    %34 = vector.shape_cast %33 : vector<128x256xi32> to vector<1x128x256xi32>
    %35 = arith.sitofp %34 : vector<1x128x256xi32> to vector<1x128x256xf32>
    %c0_8 = arith.constant 0 : index
    %c0_9 = arith.constant 0 : index
    %36 = vector.load %arg5[%c0_8, %c0_9] : memref<1x256xf32, #tpu.memory_space<vmem>>, vector<1x256xf32>
    %37 = vector.shape_cast %36 : vector<1x256xf32> to vector<1x1x256xf32>
    %38 = vector.broadcast %37 : vector<1x1x256xf32> to vector<1x128x256xf32>
    %39 = arith.subf %35, %38 : vector<1x128x256xf32>
    %c0_10 = arith.constant 0 : index
    %c0_11 = arith.constant 0 : index
    %40 = vector.load %arg4[%c0_10, %c0_11] : memref<1x256xf32, #tpu.memory_space<vmem>>, vector<1x256xf32>
    %41 = vector.shape_cast %40 : vector<1x256xf32> to vector<1x1x256xf32>
    %42 = vector.broadcast %41 : vector<1x1x256xf32> to vector<1x128x256xf32>
    %43 = arith.mulf %39, %42 : vector<1x128x256xf32>
    %44 = arith.truncf %43 : vector<1x128x256xf32> to vector<1x128x256xbf16>
    %45 = vector.shape_cast %44 : vector<1x128x256xbf16> to vector<128x256xbf16>
    %c0_12 = arith.constant 0 : index
    %c0_13 = arith.constant 0 : index
    %46 = vector.load %arg2[%c0_12, %c0_13] : memref<8x128xbf16, #tpu.memory_space<vmem>>, vector<8x128xbf16>
    %cst = arith.constant dense<0.000000e+00> : vector<8x256xf32>
    %47 = tpu.matmul %46, %45, %cst {dimension_numbers = #tpu.dot_dimension_numbers<[1], [0], [0], [1], [0, 0, 1, 1], [], []>} : vector<8x128xbf16>, vector<128x256xbf16>, vector<8x256xf32> -> vector<8x256xf32>
    %c0_14 = arith.constant 0 : index
    %c0_15 = arith.constant 0 : index
    %48 = vector.load %arg6[%c0_14, %c0_15] : memref<1x256xf32, #tpu.memory_space<vmem>>, vector<1x256xf32>
    %49 = vector.broadcast %48 : vector<1x256xf32> to vector<8x256xf32>
    %50 = arith.addf %47, %49 : vector<8x256xf32>
    %c0_16 = arith.constant 0 : index
    %c0_17 = arith.constant 0 : index
    %51 = vector.load %arg7[%c0_16, %c0_17] : memref<8x256xf32, #tpu.memory_space<vmem>>, vector<8x256xf32>
    tpu.vector_store %arg7[%c0_16, %c0_17], %50 {strides = array<i32>} : memref<8x256xf32, #tpu.memory_space<vmem>>, vector<8x256xf32>,
    return
  }
  func.func @transform_0(%arg0: i32, %arg1: i32) -> (i32, i32) {
    %c0_i32 = arith.constant 0 : i32
    %c0_i32_0 = arith.constant 0 : i32
    return %arg0, %c0_i32 : i32, i32
  }
  func.func @transform_1(%arg0: i32, %arg1: i32) -> (i32, i32) {
    %c0_i32 = arith.constant 0 : i32
    %c0_i32_0 = arith.constant 0 : i32
    return %c0_i32, %arg1 : i32, i32
  }
  func.func @transform_2(%arg0: i32, %arg1: i32) -> (i32, i32) {
    %c0_i32 = arith.constant 0 : i32
    %c0_i32_0 = arith.constant 0 : i32
    return %c0_i32, %arg1 : i32, i32
  }
  func.func @transform_3(%arg0: i32, %arg1: i32) -> (i32, i32) {
    %c0_i32 = arith.constant 0 : i32
    %c0_i32_0 = arith.constant 0 : i32
    return %c0_i32, %arg1 : i32, i32
  }
  func.func @transform_4(%arg0: i32, %arg1: i32) -> (i32, i32) {
    %c0_i32 = arith.constant 0 : i32
    %c0_i32_0 = arith.constant 0 : i32
    return %c0_i32, %arg1 : i32, i32
  }
  func.func @transform_5(%arg0: i32, %arg1: i32) -> (i32, i32) {
    %c0_i32 = arith.constant 0 : i32
    return %arg0, %arg1 : i32, i32
  }
}

</mosaic_0001>

<bundles_post_ra>
// kernel: tpu_custom_call.1
= control target key start
LH: loop header
LB: loop body
LE: loop exit
PB: predicated region body
PF: predicated region fallthrough
CT: control target
= control target key end

     0   :  { %10 = vsyncpa [#allocation3], 0  ;;  %s612_s0 = inlined_call_operand.hbm [shape: bf16[8,128], index: 0, kind: input, shape index: {}]   ;;  %s613_s1 = inlined_call_operand.hbm [shape: s32[16,256], index: 1, kind: input, shape index: {}]   ;;  %s614_s2 = inlined_call_operand.vmem [shape: f32[1,256], index: 2, kind: input, shape index: {}]   ;;  %s615_s3 = inlined_call_operand.vmem [shape: f32[1,256], index: 3, kind: input, shape index: {}]   ;;  %s616_s4 = inlined_call_operand.vmem [shape: f32[1,256], index: 4, kind: input, shape index: {}]   ;;  %s617_s5 = inlined_call_operand.hbm [shape: f32[8,256], index: 5, kind: output, shape index: {}]  }
   0x1   :  { %11 = vsyncpa [#allocation6], 0 }
   0x2   :  { %12 = vsyncpa [#allocation4], 0  ;;  %s402_s18 = smov [#allocation2]   ;;  %s403_s20 = smov [#allocation5]  }
   0x3   :  { %s19_s19 = sshll.u32 %s402_s18, 4  ;;  %s28_s21 = sshll.u32 %s403_s20, 4  ;;  %s20_s19 = int_to_ptr.vmem [resolvable:$true] %s19_s19  ;;  %s438_s21 = int_to_ptr.vmem [resolvable:$true] %s28_s21 }
   0x4   :  { %s330_s24 = scalar_lea.hbm %s612_s0, 64 }
   0x5   :  { %p331_p0 = scmp.ne.s32.totalorder %s612_s0, %s330_s24  ;;  %p334_p1 = scmp.lt.u32.totalorder %s330_s24, %s612_s0 }
   0x7   :  { %p336_p2 = pnand %p334_p1, %p331_p0 }
   0x9   :  { %339 = shalt.err (!%p336_p2)
}
   0xa   :  { %s340_s29 = scalar_lea.vmem %s20_s19, 64  ;;  %p345_p4 = scmp.lt.s32.totalorder %s20_s19, %s20_s19 }
   0xb   :  { %p341_p3 = scmp.ne.s32.totalorder %s20_s19, %s340_s29  ;;  %p346_p5 = scmp.lt.s32.totalorder %s340_s29, %s340_s29 }
   0xd   :  { %p347_p6 = por %p346_p5, %p345_p4 }
   0xf   :  { %p348_p7 = pnand %p347_p6, %p341_p3 }
  0x11   :  { %351 = shalt.err (!%p348_p7)
}
  0x12   :  { %22 = dma.hbm_to_vmem [thread:$0]  %s612_s0, 64, %s20_s19, [#allocation3]  }
  0x13   :  { %s352_s9 = scalar_lea.hbm %s613_s1, 512 }
  0x14   :  { %p353_p8 = scmp.ne.s32.totalorder %s613_s1, %s352_s9  ;;  %p356_p9 = scmp.lt.u32.totalorder %s352_s9, %s613_s1 }
  0x16   :  { %p358_p10 = pnand %p356_p9, %p353_p8 }
  0x18   :  { %361 = shalt.err (!%p358_p10)
}
  0x19   :  { %s362_s14 = scalar_lea.vmem %s438_s21, 512  ;;  %p367_p12 = scmp.lt.s32.totalorder %s438_s21, %s438_s21 }
  0x1a   :  { %p363_p11 = scmp.ne.s32.totalorder %s438_s21, %s362_s14  ;;  %p368_p13 = scmp.lt.s32.totalorder %s362_s14, %s362_s14 }
  0x1c   :  { %p369_p0 = por %p368_p13, %p367_p12 }
  0x1e   :  { %p370_p1 = pnand %p369_p0, %p363_p11 }
  0x20   :  { %373 = shalt.err (!%p370_p1)
}
  0x21   :  { %s404_s0 = smov 256   ;;  %s405_s15 = smov 16  }
  0x22   :  { %34 = dma.hbm_to_vmem [thread:$0]  %s613_s1, 512, %s438_s21, [#allocation6], %s404_s0, %s404_s0, %s405_s15  }
  0x23   :  { %396 = dma.done.wait [#allocation3], 64  }
  0x24   :  { %397 = vsyncadd [#allocation3], 4294967232 }
  0x25   :  { %398 = dma.done.wait [#allocation6], 512  }
  0x26   :  { %399 = vsyncadd [#allocation6], 4294966784  ;;  %v146_v0 = vlaneseq  ;;  %v406_v1 = vmov 0   ;;  %v473_v5 = vld [vmem:[#allocation5 + $0x8] sm:$0xff]  ;;  %v475_v6 = vld [vmem:[#allocation5 + $0x18] sm:$0xff]  ;;  %s407_s21 = smov [#allocation7]  }
  0x27   :  { %293 = vmatprep.mubr.bf16.mxu0 %v406_v1  ;;  %v144_v7 = vld [vmem:[%s615_s3] sm:$0x3]  ;;  %v53_v8 = vand.u32 15, %v473_v5  ;;  %v55_v9 = vand.u32 15, %v475_v6  ;;  %v488_v12 = vld [vmem:[#allocation5] sm:$0xff]  ;;  %v490_v13 = vld [vmem:[#allocation5 + $0x10] sm:$0xff] }
  0x28   :  { %v147_v2 = vshrl.u32 %v146_v0, 7  ;;  %v188_v11 = vld [vmem:[%s614_s2] sm:$0x3]  ;;  %v52_v16 = vand.u32 15, %v488_v12  ;;  %v54_v17 = vand.u32 15, %v490_v13  ;;  %v57_v21 = vshra.s32 %v473_v5, 4 }
  0x29   :  { %v113_v19 = vcvt.s32.f32 %v53_v8  ;;  %v115_v20 = vcvt.s32.f32 %v55_v9  ;;  %v59_v22 = vshra.s32 %v475_v6, 4  ;;  %v56_v25 = vshra.s32 %v488_v12, 4  ;;  %s310_s22 = sshll.u32 %s407_s21, 4  ;;  %s311_s22 = int_to_ptr.vmem [resolvable:$true] %s310_s22 }
  0x2a   :  { %v469_v3 = vsub.s32 1, %v147_v2  ;;  %v471_v4 = vsub.s32 0, %v147_v2  ;;  %v112_v23 = vcvt.s32.f32 %v52_v16  ;;  %v114_v24 = vcvt.s32.f32 %v54_v17  ;;  %s374_s23 = scalar_lea.vmem %s311_s22, 256  ;;  %p379_p3 = scmp.lt.s32.totalorder %s311_s22, %s311_s22 }
  0x2b   :  { %v58_v26 = vshra.s32 %v490_v13, 4  ;;  %v61_v29 = vand.u32 15, %v57_v21  ;;  %v63_v30 = vand.u32 15, %v59_v22  ;;  %v60_v33 = vand.u32 15, %v56_v25  ;;  %p375_p2 = scmp.ne.s32.totalorder %s311_s22, %s374_s23  ;;  %p380_p4 = scmp.lt.s32.totalorder %s374_s23, %s374_s23 }
  0x2c   :  { %v483_v10 = vrot.slane %v144_v7, %v469_v3  ;;  %v493_v14 = vrot.slane %v144_v7, %v471_v4  ;;  %v496_v15 = vrot.slane %v188_v11, %v469_v3  ;;  %v501_v18 = vrot.slane %v188_v11, %v471_v4 }
  0x2d   :  { %v62_v34 = vand.u32 15, %v58_v26  ;;  %v117_v37 = vcvt.s32.f32 %v61_v29  ;;  %v119_v38 = vcvt.s32.f32 %v63_v30  ;;  %v116_v41 = vcvt.s32.f32 %v60_v33  ;;  %p381_p5 = por %p380_p4, %p379_p3 }
  0x2e   :  { %v157_v27 = vsub.f32 %v113_v19, %v483_v10  ;;  %v159_v28 = vsub.f32 %v115_v20, %v483_v10  ;;  %v156_v31 = vsub.f32 %v112_v23, %v493_v14  ;;  %v158_v32 = vsub.f32 %v114_v24, %v493_v14 }
  0x2f   :  { %v118_v42 = vcvt.s32.f32 %v62_v34  ;;  %v161_v44 = vsub.f32 %v117_v37, %v483_v10  ;;  %v163_v45 = vsub.f32 %v119_v38, %v483_v10  ;;  %v65_v46 = vshra.s32 %v473_v5, 8  ;;  %p382_p6 = pnand %p381_p5, %p375_p2 }
  0x30   :  { %v201_v35 = vmul.f32 %v496_v15, %v157_v27  ;;  %v203_v36 = vmul.f32 %v496_v15, %v159_v28  ;;  %v200_v39 = vmul.f32 %v501_v18, %v156_v31  ;;  %v202_v40 = vmul.f32 %v501_v18, %v158_v32 }
  0x31   :  { %v160_v48 = vsub.f32 %v116_v41, %v493_v14  ;;  %v162_v49 = vsub.f32 %v118_v42, %v493_v14  ;;  %v67_v50 = vshra.s32 %v475_v6, 8  ;;  %v205_v51 = vmul.f32 %v496_v15, %v161_v44 }
  0x32   :  { %v233_v43 = vpack.c.bf16 %v203_v36, %v201_v35  ;;  %v232_v47 = vpack.c.bf16 %v202_v40, %v200_v39  ;;  %v207_v52 = vmul.f32 %v496_v15, %v163_v45  ;;  %v69_v53 = vand.u32 15, %v65_v46 }
  0x33   :  { %v64_v54 = vshra.s32 %v488_v12, 8  ;;  %v204_v55 = vmul.f32 %v501_v18, %v160_v48  ;;  %v206_v56 = vmul.f32 %v501_v18, %v162_v49  ;;  %v71_v57 = vand.u32 15, %v67_v50 }
  0x34   :  { %261 = vmatprep.subr.bf16.mxu0 %v233_v43  ;;  %v66_v58 = vshra.s32 %v490_v13, 8  ;;  %v235_v59 = vpack.c.bf16 %v207_v52, %v205_v51  ;;  %v121_v60 = vcvt.s32.f32 %v69_v53  ;;  %v73_v62 = vshra.s32 %v473_v5, 12 }
  0x35   :  { %262 = vmatpush1.bf16.msra.mxu0 %v232_v47  ;;  %v68_v61 = vand.u32 15, %v64_v54  ;;  %v234_v63 = vpack.c.bf16 %v206_v56, %v204_v55  ;;  %v123_v0 = vcvt.s32.f32 %v71_v57  ;;  %v75_v2 = vshra.s32 %v475_v6, 12 }
  0x36   :  { %v70_v1 = vand.u32 15, %v66_v58  ;;  %263 = vmatprep.subr.bf16.mxu0 %v235_v59  ;;  %v165_v7 = vsub.f32 %v121_v60, %v483_v10  ;;  %v77_v9 = vand.u32 15, %v73_v62  ;;  %v72_v11 = vshra.s32 %v488_v12, 12 }
  0x37   :  { %v120_v8 = vcvt.s32.f32 %v68_v61  ;;  %v167_v16 = vsub.f32 %v123_v0, %v483_v10  ;;  %v79_v19 = vand.u32 15, %v75_v2  ;;  %v74_v20 = vshra.s32 %v490_v13, 12 }
  0x38   :  { %v122_v17 = vcvt.s32.f32 %v70_v1  ;;  %v209_v21 = vmul.f32 %v496_v15, %v165_v7  ;;  %v125_v23 = vcvt.s32.f32 %v77_v9  ;;  %v76_v24 = vand.u32 15, %v72_v11 }
  0x39   :  { %264 = vmatpush1.bf16.msra.mxu0 %v234_v63  ;;  %v164_v22 = vsub.f32 %v120_v8, %v493_v14  ;;  %v211_v25 = vmul.f32 %v496_v15, %v167_v16  ;;  %v127_v27 = vcvt.s32.f32 %v79_v19  ;;  %v78_v28 = vand.u32 15, %v74_v20 }
  0x3a   :  { %v166_v26 = vsub.f32 %v122_v17, %v493_v14  ;;  %v169_v30 = vsub.f32 %v125_v23, %v483_v10  ;;  %v124_v31 = vcvt.s32.f32 %v76_v24  ;;  %v81_v32 = vshra.s32 %v473_v5, 16 }
  0x3b   :  { %v208_v29 = vmul.f32 %v501_v18, %v164_v22  ;;  %v237_v33 = vpack.c.bf16 %v211_v25, %v209_v21  ;;  %v171_v35 = vsub.f32 %v127_v27, %v483_v10  ;;  %v126_v36 = vcvt.s32.f32 %v78_v28 }
  0x3c   :  { %v210_v34 = vmul.f32 %v501_v18, %v166_v26  ;;  %v213_v37 = vmul.f32 %v496_v15, %v169_v30  ;;  %v168_v38 = vsub.f32 %v124_v31, %v493_v14  ;;  %v83_v39 = vshra.s32 %v475_v6, 16 }
  0x3d   :  { %v85_v40 = vand.u32 15, %v81_v32  ;;  %265 = vmatprep.subr.bf16.mxu0 %v237_v33  ;;  %v215_v42 = vmul.f32 %v496_v15, %v171_v35  ;;  %v170_v43 = vsub.f32 %v126_v36, %v493_v14  ;;  %v80_v44 = vshra.s32 %v488_v12, 16 }
  0x3e   :  { %v236_v41 = vpack.c.bf16 %v210_v34, %v208_v29  ;;  %v212_v45 = vmul.f32 %v501_v18, %v168_v38  ;;  %v87_v46 = vand.u32 15, %v83_v39  ;;  %v82_v48 = vshra.s32 %v490_v13, 16 }
  0x3f   :  { %v129_v47 = vcvt.s32.f32 %v85_v40  ;;  %v239_v49 = vpack.c.bf16 %v215_v42, %v213_v37  ;;  %v214_v50 = vmul.f32 %v501_v18, %v170_v43  ;;  %v84_v51 = vand.u32 15, %v80_v44 }
  0x40   :  { %266 = vmatpush1.bf16.msra.mxu0 %v236_v41  ;;  %v89_v52 = vshra.s32 %v473_v5, 20  ;;  %v131_v53 = vcvt.s32.f32 %v87_v46  ;;  %v86_v55 = vand.u32 15, %v82_v48  ;;  %v91_v56 = vshra.s32 %v475_v6, 20 }
  0x41   :  { %v173_v54 = vsub.f32 %v129_v47, %v483_v10  ;;  %267 = vmatprep.subr.bf16.mxu0 %v239_v49  ;;  %v238_v57 = vpack.c.bf16 %v214_v50, %v212_v45  ;;  %v128_v58 = vcvt.s32.f32 %v84_v51  ;;  %v88_v60 = vshra.s32 %v488_v12, 20 }
  0x42   :  { %v93_v59 = vand.u32 15, %v89_v52  ;;  %v175_v61 = vsub.f32 %v131_v53, %v483_v10  ;;  %v130_v63 = vcvt.s32.f32 %v86_v55  ;;  %v95_v0 = vand.u32 15, %v91_v56 }
  0x43   :  { %v217_v62 = vmul.f32 %v496_v15, %v173_v54  ;;  %v172_v1 = vsub.f32 %v128_v58, %v493_v14  ;;  %v90_v7 = vshra.s32 %v490_v13, 20  ;;  %v92_v8 = vand.u32 15, %v88_v60 }
  0x44   :  { %268 = vmatpush1.bf16.msra.mxu0 %v238_v57  ;;  %v133_v2 = vcvt.s32.f32 %v93_v59  ;;  %v219_v9 = vmul.f32 %v496_v15, %v175_v61  ;;  %v174_v11 = vsub.f32 %v130_v63, %v493_v14  ;;  %v135_v16 = vcvt.s32.f32 %v95_v0 }
  0x45   :  { %v97_v17 = vshra.s32 %v473_v5, 24  ;;  %v216_v19 = vmul.f32 %v501_v18, %v172_v1  ;;  %v94_v21 = vand.u32 15, %v90_v7  ;;  %v132_v22 = vcvt.s32.f32 %v92_v8 }
  0x46   :  { %v177_v20 = vsub.f32 %v133_v2, %v483_v10  ;;  %v241_v23 = vpack.c.bf16 %v219_v9, %v217_v62  ;;  %v218_v24 = vmul.f32 %v501_v18, %v174_v11  ;;  %v179_v25 = vsub.f32 %v135_v16, %v483_v10  ;;  %v248_v11 = vld [vmem:[#allocation2] sm:$0xf] }
  0x47   :  { %v99_v26 = vshra.s32 %v475_v6, 24  ;;  %v134_v28 = vcvt.s32.f32 %v94_v21  ;;  %v176_v29 = vsub.f32 %v132_v22, %v493_v14  ;;  %v101_v30 = vand.u32 15, %v97_v17 }
  0x48   :  { %v221_v27 = vmul.f32 %v496_v15, %v177_v20  ;;  %269 = vmatprep.subr.bf16.mxu0 %v241_v23  ;;  %v240_v31 = vpack.c.bf16 %v218_v24, %v216_v19  ;;  %v223_v32 = vmul.f32 %v496_v15, %v179_v25  ;;  %v96_v34 = vshra.s32 %v488_v12, 24 }
  0x49   :  { %v103_v33 = vand.u32 15, %v99_v26  ;;  %v178_v35 = vsub.f32 %v134_v28, %v493_v14  ;;  %v220_v36 = vmul.f32 %v501_v18, %v176_v29  ;;  %v137_v37 = vcvt.s32.f32 %v101_v30 }
  0x4a   :  { %v98_v38 = vshra.s32 %v490_v13, 24  ;;  %270 = vmatpush1.bf16.msra.mxu0 %v240_v31  ;;  %v243_v39 = vpack.c.bf16 %v223_v32, %v221_v27  ;;  %v100_v41 = vand.u32 15, %v96_v34  ;;  %v321_v42 = vshrl.u32 %v473_v5, 28 }
  0x4b   :  { %v139_v40 = vcvt.s32.f32 %v103_v33  ;;  %v222_v43 = vmul.f32 %v501_v18, %v178_v35  ;;  %v181_v44 = vsub.f32 %v137_v37, %v483_v10  ;;  %v323_v46 = vshrl.u32 %v475_v6, 28 }
  0x4c   :  { %v102_v45 = vand.u32 15, %v98_v38  ;;  %271 = vmatprep.subr.bf16.mxu0 %v243_v39  ;;  %v136_v48 = vcvt.s32.f32 %v100_v41  ;;  %v141_v49 = vcvt.s32.f32 %v321_v42  ;;  %v320_v50 = vshrl.u32 %v488_v12, 28 }
  0x4d   :  { %v183_v47 = vsub.f32 %v139_v40, %v483_v10  ;;  %v242_v51 = vpack.c.bf16 %v222_v43, %v220_v36  ;;  %v225_v52 = vmul.f32 %v496_v15, %v181_v44  ;;  %v143_v54 = vcvt.s32.f32 %v323_v46 }
  0x4e   :  { %v138_v53 = vcvt.s32.f32 %v102_v45  ;;  %v180_v55 = vsub.f32 %v136_v48, %v493_v14  ;;  %v185_v56 = vsub.f32 %v141_v49, %v483_v10  ;;  %v322_v6 = vshrl.u32 %v490_v13, 28 }
  0x4f   :  { %v227_v5 = vmul.f32 %v496_v15, %v183_v47  ;;  %272 = vmatpush1.bf16.msra.mxu0 %v242_v51  ;;  %v187_v58 = vsub.f32 %v143_v54, %v483_v10  ;;  %v140_v59 = vcvt.s32.f32 %v320_v50 }
  0x50   :  { %v182_v57 = vsub.f32 %v138_v53, %v493_v14  ;;  %v224_v60 = vmul.f32 %v501_v18, %v180_v55  ;;  %v229_v61 = vmul.f32 %v496_v15, %v185_v56  ;;  %v142_v62 = vcvt.s32.f32 %v322_v6 }
  0x51   :  { %v245_v12 = vpack.c.bf16 %v227_v5, %v225_v52  ;;  %v231_v0 = vmul.f32 %v496_v15, %v187_v58  ;;  %v184_v1 = vsub.f32 %v140_v59, %v493_v14  ;;  %v249_v15 = vld [vmem:[%s616_s4] sm:$0x3] }
  0x52   :  { %v226_v63 = vmul.f32 %v501_v18, %v182_v57  ;;  %v186_v13 = vsub.f32 %v142_v62, %v493_v14  ;;  %v254_v16 = vrot.slane %v249_v15, %v471_v4  ;;  %v258_v14 = vrot.slane %v249_v15, %v469_v3 }
  0x53   :  { %273 = vmatprep.subr.bf16.mxu0 %v245_v12  ;;  %v247_v7 = vpack.c.bf16 %v231_v0, %v229_v61  ;;  %v228_v10 = vmul.f32 %v501_v18, %v184_v1 }
  0x54   :  { %v244_v2 = vpack.c.bf16 %v226_v63, %v224_v60  ;;  %v230_v8 = vmul.f32 %v501_v18, %v186_v13 }
  0x56   :  { %274 = vmatpush1.bf16.msra.mxu0 %v244_v2  ;;  %v246_v9 = vpack.c.bf16 %v230_v8, %v228_v10 }
  0x57   :  { %275 = vmatprep.subr.bf16.mxu0 %v247_v7 }
  0x5a   :  { %276 = vmatpush1.bf16.msra.mxu0 %v246_v9 }
  0x5d   :  { %294 = vmatmul.mubr.bf16.vlgmr.msra.gmra.mrb[0].mxu0 %v248_v11 }
 0x130   :  { %v295_v17 = vpop.f32.mrb[0].mxu0 }
 0x131   :  { %v296_v19 = vadd.f32 %v295_v17, %v254_v16  ;;  %v297_v20 = vpop.f32.mrb[1].mxu0 }
 0x132   :  { %v298_v18 = vadd.f32 %v297_v20, %v258_v14  ;;  %v299_v21 = vpop.f32.mrb[2].mxu0 }
 0x133   :  { %302 = vst [vmem:[#allocation7] sm:$0xff] %v296_v19  ;;  %v300_v22 = vpop.f32.mrb[3].mxu0 }
 0x134   :  { %303 = vst [vmem:[#allocation7 + $0x8] sm:$0xff] %v298_v18 }
 0x135   :  { %385 = shalt.err (!%p382_p6)
}
 0x136   :  { %s386_s25 = scalar_lea.hbm %s617_s5, 256 }
 0x137   :  { %p387_p7 = scmp.ne.s32.totalorder %s617_s5, %s386_s25  ;;  %p390_p8 = scmp.lt.u32.totalorder %s386_s25, %s617_s5 }
 0x139   :  { %p392_p9 = pnand %p390_p8, %p387_p7 }
 0x13b   :  { %395 = shalt.err (!%p392_p9)
}
 0x13c   :  { %313 = dma.vmem_to_hbm [thread:$0]  %s311_s22, 256, %s617_s5, [#allocation4]  }
 0x13d   :  { %400 = dma.done.wait [#allocation4], 256  }
 0x13e   :  { %401 = vsyncadd [#allocation4], 4294967040 }
 0x13f   :  { %317 = vsyncpa [#allocation3], 1 }
 0x140   :  { %318 = vsyncpa [#allocation6], 1 }
 0x141   :  { %319 = vsyncpa [#allocation4], 1 }

</bundles_post_ra>
